<compile_context>
chip_gen: v5e
topology: v5e:2x2
jax: 0.10.0
libtpu: 0.0.40
codegen_flags: <defaults>
</compile_context>

<pallas_src>
import jax
import jax.numpy as jnp
from jax.experimental import pallas as pl
from jax.experimental.pallas import tpu as pltpu


def _pick_row_tile(total_rows, num_experts, cap=256):
    """Row tile for the grouped expert matmul.

    Aim for roughly one tile per expert under uniform routing (keeps the
    per-group padding overhead small for small problems) while capping at
    256 rows (fills the 256-wide MXU on v6e/v7x; larger tiles mostly add
    padding slack because each expert group is padded to a tile multiple).
    """
    target = max(8, total_rows // max(num_experts, 1))
    t = 8
    while t * 2 <= min(cap, target):
        t *= 2
    return t


def _vmem_limit_bytes(tm, d, h):
    per_buf = (tm * d * 2                    # x tile (bf16)
               + tm * d * 4                  # out tile (f32)
               + tm * 4                      # per-row routing weights (f32)
               + d * h * 2 + h * d * 2       # w1 + w2 (bf16)
               + h * 4 + d * 4)              # b1 + b2 (f32)
    need = 2 * per_buf + (1 << 20)           # double-buffered + slack
    # Clamp under v7x's 64 MiB physical VMEM; on v5e/v6e (128 MiB) this could
    # be raised toward ~100 MiB.  For realistic D/H on v7x, add an H-tiling
    # grid axis instead of shrinking the row tile (see review).
    return int(min(max(need, 16 << 20), 48 << 20))


# ---------------------------------------------------------------------------
# Grouped expert kernel
#   grid = (row tiles of the expert-sorted token stream,)
# Each tile belongs to exactly one expert; its id arrives via scalar prefetch
# and selects that expert's weights in the index_maps.  Consecutive tiles of
# the same expert keep the same weight block index, so Pallas elides the
# weight re-DMA (weights stream from HBM at most once per expert per call).
# ---------------------------------------------------------------------------
def moe_expert_kernel(te_ref, tc_ref, x_ref, w1_ref, b1_ref, w2_ref, b2_ref,
                      wt_ref, y_ref):
    t = pl.program_id(0)

    @pl.when(tc_ref[t] > 0)
    def _compute():
        # x: (TM, D) bf16, w1: (D, H) bf16, b1: (1, H) f32,
        # w2: (H, D) bf16, b2: (1, D) f32, wt: (TM, 1) f32, y: (TM, D) f32
        h = jnp.dot(x_ref[...], w1_ref[...],
                    preferred_element_type=jnp.float32) + b1_ref[...]
        h = jnp.maximum(h, 0.0)                                   # ReLU
        # TODO(synk): dropout omitted (inference identity in eval()).
        y = jnp.dot(h.astype(w2_ref.dtype), w2_ref[...],
                    preferred_element_type=jnp.float32) + b2_ref[...]
        # Padding rows inside a live tile carry weight exactly 0.0, so they
        # contribute nothing (review correctness note).
        y_ref[...] = wt_ref[...] * y

    @pl.when(tc_ref[t] == 0)
    def _empty():                     # capacity-slack tile: no routed rows
        y_ref[...] = jnp.zeros_like(y_ref)


def grouped_expert_forward(tile_expert, tile_count, x_g, w1, b1, w2, b2,
                           row_w, tm):
    cap, d = x_g.shape
    e, _, h = w1.shape
    num_tiles = cap // tm
    return pl.pallas_call(
        moe_expert_kernel,
        out_shape=jax.ShapeDtypeStruct((cap, d), jnp.float32),
        grid_spec=pltpu.PrefetchScalarGridSpec(
            num_scalar_prefetch=2,          # tile_expert, tile_count -> SMEM
            grid=(num_tiles,),
            in_specs=[
                pl.BlockSpec((tm, d), lambda t, te, tc: (t, 0)),
                pl.BlockSpec((None, d, h), lambda t, te, tc: (te[t], 0, 0)),
                pl.BlockSpec((None, 1, h), lambda t, te, tc: (te[t], 0, 0)),
                pl.BlockSpec((None, h, d), lambda t, te, tc: (te[t], 0, 0)),
                pl.BlockSpec((None, 1, d), lambda t, te, tc: (te[t], 0, 0)),
                pl.BlockSpec((tm, 1), lambda t, te, tc: (t, 0)),
            ],
            out_specs=pl.BlockSpec((tm, d), lambda t, te, tc: (t, 0)),
        ),
        compiler_params=pltpu.CompilerParams(
            # Row-tile axis is independent (each output block written once):
            # "parallel" lets v7x shard it across its 2 TensorCores.
            dimension_semantics=("parallel",),
            vmem_limit_bytes=_vmem_limit_bytes(tm, d, h),
        ),
    )(tile_expert, tile_count, x_g, w1, b1, w2, b2, row_w)


# ---------------------------------------------------------------------------
# Full module forward
# ---------------------------------------------------------------------------
def mixture_of_experts(x, params, top_k=2):
    B, S, D = x.shape
    N = B * S
    E, _, H = params["w1"].shape

    x_flat = x.reshape(N, D)
    x_bf16 = x_flat.astype(jnp.bfloat16)

    w1 = params["w1"].astype(jnp.bfloat16)
    w2 = params["w2"].astype(jnp.bfloat16)
    b1 = params["b1"].astype(jnp.float32)          # (E, 1, H)
    b2 = params["b2"].astype(jnp.float32)          # (E, 1, D)

    # --- gate: linear + softmax in plain XLA (review: negligible work and
    #     lane-sparse as a Pallas kernel) ---
    logits = jnp.dot(x_bf16, params["wg_t"].astype(jnp.bfloat16),
                     preferred_element_type=jnp.float32)
    logits = logits + params["bg"].astype(jnp.float32)
    probs = jax.nn.softmax(logits, axis=-1)

    topk_scores, topk_idx = jax.lax.top_k(probs, top_k)            # (N, k)
    topk_scores = topk_scores / (jnp.sum(topk_scores, -1, keepdims=True)
                                 + 1e-20)                          # eps guard

    # --- grouped (megablocks-style) routing: sort (token, k) pairs by expert,
    #     pad each expert group to a multiple of the row tile ---
    R = N * top_k
    tm = _pick_row_tile(R, E)

    expert_ids = topk_idx.reshape(R).astype(jnp.int32)             # (R,)
    pair_w = topk_scores.reshape(R).astype(jnp.float32)            # (R,)
    token_ids = jnp.repeat(jnp.arange(N, dtype=jnp.int32), top_k)  # (R,)

    order = jnp.argsort(expert_ids)                                # group rows
    sorted_expert = expert_ids[order]
    sorted_token = token_ids[order]
    sorted_w = pair_w[order]

    group_sizes = jnp.bincount(expert_ids, length=E)               # (E,)
    padded_sizes = ((group_sizes + tm - 1) // tm) * tm
    group_start = jnp.cumsum(group_sizes) - group_sizes
    padded_end = jnp.cumsum(padded_sizes)
    padded_start = padded_end - padded_sizes
    total_padded = padded_end[-1].astype(jnp.int32)

    # static worst-case capacity (each group padded by at most tm-1 rows)
    cap = ((R + E * (tm - 1) + tm - 1) // tm) * tm
    num_tiles = cap // tm

    rank = (jnp.arange(R, dtype=jnp.int32)
            - group_start[sorted_expert].astype(jnp.int32))
    dest = padded_start[sorted_expert].astype(jnp.int32) + rank    # padded slot

    # padded gather indices / per-row routing weights
    # (padding rows: token 0, weight exactly 0.0 -> contribute nothing)
    gather_idx = jnp.zeros((cap,), jnp.int32).at[dest].set(sorted_token)
    row_w = jnp.zeros((cap, 1), jnp.float32).at[dest, 0].set(sorted_w)
    x_gathered = x_bf16[gather_idx]                                # (cap, D)

    # per-tile expert id (drives weight index_maps) and real-row count
    tile_start = jnp.arange(num_tiles, dtype=jnp.int32) * tm
    raw_expert = jnp.searchsorted(padded_end.astype(jnp.int32), tile_start,
                                  side="right").astype(jnp.int32)
    last_used = jnp.max(jnp.where(group_sizes > 0,
                                  jnp.arange(E, dtype=jnp.int32), 0))
    tile_expert = jnp.where(tile_start < total_padded,
                            jnp.minimum(raw_expert, E - 1),
                            last_used).astype(jnp.int32)
    tile_count = jnp.bincount(dest // tm, length=num_tiles).astype(jnp.int32)

    # --- expert MLPs on the grouped rows (Pallas) ---
    y = grouped_expert_forward(tile_expert, tile_count, x_gathered,
                               w1, b1, w2, b2, row_w, tm)          # (cap, D)

    # --- un-permute and combine the top_k contributions per token ---
    pair_pos = jnp.zeros((R,), jnp.int32).at[order].set(dest)      # (R,)
    out = y[pair_pos].reshape(N, top_k, D).sum(axis=1)             # (N, D) f32
    return out.reshape(B, S, D)


# ---------------------------------------------------------------------------
# Pure-JAX reference (mirrors the PyTorch loop, precision-matched: bf16 MXU
# inputs, f32 accumulation) for verification
# ---------------------------------------------------------------------------
def reference(x, params, top_k=2):
    B, S, D = x.shape
    N = B * S
    E, _, H = params["w1"].shape
    xb = x.reshape(N, D).astype(jnp.bfloat16)

    logits = jnp.dot(xb, params["wg_t"].astype(jnp.bfloat16),
                     preferred_element_type=jnp.float32) + params["bg"]
    probs = jax.nn.softmax(logits, axis=-1)
    scores, idx = jax.lax.top_k(probs, top_k)
    scores = scores / jnp.sum(scores, -1, keepdims=True)

    out = jnp.zeros((N, D), jnp.float32)
    for i in range(top_k):
        for e in range(E):
            h = jnp.dot(xb, params["w1"][e].astype(jnp.bfloat16),
                        preferred_element_type=jnp.float32) + params["b1"][e, 0]
            h = jnp.maximum(h, 0.0)
            y = jnp.dot(h.astype(jnp.bfloat16),
                        params["w2"][e].astype(jnp.bfloat16),
                        preferred_element_type=jnp.float32) + params["b2"][e, 0]
            m = (idx[:, i] == e).astype(jnp.float32)[:, None]
            out = out + m * scores[:, i:i + 1] * y
    return out.reshape(B, S, D)


if __name__ == "__main__":
    # small but TPU-tile-friendly shapes (D is a lane-dense 128 multiple)
    B, S, D = 4, 64, 128          # N = B*S = 256 tokens
    E, H, TOP_K = 8, 256, 2       # num_experts, expert_dim, top_k

    key = jax.random.PRNGKey(0)
    k_x, k_wg, k_bg, k_w1, k_b1, k_w2, k_b2 = jax.random.split(key, 7)

    params = {
        "wg_t": jax.random.normal(k_wg, (D, E), jnp.float32) * (1.0 / D ** 0.5),
        "bg":   jax.random.normal(k_bg, (E,), jnp.float32) * 0.01,
        "w1":   jax.random.normal(k_w1, (E, D, H), jnp.float32) * (1.0 / D ** 0.5),
        "b1":   jax.random.normal(k_b1, (E, 1, H), jnp.float32) * 0.01,
        "w2":   jax.random.normal(k_w2, (E, H, D), jnp.float32) * (1.0 / H ** 0.5),
        "b2":   jax.random.normal(k_b2, (E, 1, D), jnp.float32) * 0.01,
    }

    x = jax.random.normal(k_x, (B, S, D), jnp.float32)

    out = mixture_of_experts(x, params, top_k=TOP_K)
    out = jax.block_until_ready(out)

    ref = reference(x, params, top_k=TOP_K)
    assert out.shape == (B, S, D)
    assert jnp.allclose(out, ref, atol=2e-3, rtol=2e-3), "mismatch vs reference"

    print("KERNEL_OK")
</pallas_src>

<mosaic_0001>
module attributes {stable_mosaic.version = 11 : i64} {
  func.func @moe_expert_kernel(%arg0: i32, %arg1: memref<16xi32, #tpu.memory_space<smem>>, %arg2: memref<16xi32, #tpu.memory_space<smem>>, %arg3: memref<64x128xbf16, #tpu.memory_space<vmem>>, %arg4: memref<1x128x256xbf16, #tpu.memory_space<vmem>>, %arg5: memref<1x1x256xf32, #tpu.memory_space<vmem>>, %arg6: memref<1x256x128xbf16, #tpu.memory_space<vmem>>, %arg7: memref<1x1x128xf32, #tpu.memory_space<vmem>>, %arg8: memref<64x1xf32, #tpu.memory_space<vmem>>, %arg9: memref<64x128xf32, #tpu.memory_space<vmem>>) attributes {dimension_semantics = [#tpu.dimension_semantics<parallel>], iteration_bounds = array<i64: 16>, scalar_prefetch = 2 : i64, scratch_operands = 0 : i64, tpu.core_type = #tpu.core_type<tc>, window_params = [{transform_indices = @transform_0, window_bounds = array<i64: 64, 128>}, {transform_indices = @transform_1, window_bounds = array<i64: 1, 128, 256>}, {transform_indices = @transform_2, window_bounds = array<i64: 1, 1, 256>}, {transform_indices = @transform_3, window_bounds = array<i64: 1, 256, 128>}, {transform_indices = @transform_4, window_bounds = array<i64: 1, 1, 128>}, {transform_indices = @transform_5, window_bounds = array<i64: 64, 1>}, {transform_indices = @transform_6, window_bounds = array<i64: 64, 128>}]} {
    %0 = arith.index_cast %arg0 : i32 to index
    %1 = memref.load %arg2[%0] : memref<16xi32, #tpu.memory_space<smem>>
    %c0_i32 = arith.constant 0 : i32
    %2 = arith.cmpi sgt, %1, %c0_i32 : i32
    %3 = arith.extui %2 : i1 to i32
    %c0_i32_0 = arith.constant 0 : i32
    %4 = arith.cmpi ne, %3, %c0_i32_0 : i32
    scf.if %4 {
      %c0 = arith.constant 0 : index
      %c0_3 = arith.constant 0 : index
      %10 = vector.load %arg3[%c0, %c0_3] : memref<64x128xbf16, #tpu.memory_space<vmem>>, vector<64x128xbf16>
      %c0_4 = arith.constant 0 : index
      %c0_5 = arith.constant 0 : index
      %c0_6 = arith.constant 0 : index
      %11 = vector.load %arg4[%c0_4, %c0_5, %c0_6] : memref<1x128x256xbf16, #tpu.memory_space<vmem>>, vector<1x128x256xbf16>
      %12 = vector.shape_cast %11 : vector<1x128x256xbf16> to vector<128x256xbf16>
      %cst = arith.constant dense<0.000000e+00> : vector<64x256xf32>
      %13 = tpu.matmul %10, %12, %cst {dimension_numbers = #tpu.dot_dimension_numbers<[1], [0], [0], [1], [0, 0, 1, 1], [], []>} : vector<64x128xbf16>, vector<128x256xbf16>, vector<64x256xf32> -> vector<64x256xf32>
      %c0_7 = arith.constant 0 : index
      %c0_8 = arith.constant 0 : index
      %c0_9 = arith.constant 0 : index
      %14 = vector.load %arg5[%c0_7, %c0_8, %c0_9] : memref<1x1x256xf32, #tpu.memory_space<vmem>>, vector<1x1x256xf32>
      %15 = vector.shape_cast %14 : vector<1x1x256xf32> to vector<1x256xf32>
      %16 = vector.broadcast %15 : vector<1x256xf32> to vector<64x256xf32>
      %17 = arith.addf %13, %16 : vector<64x256xf32>
      %cst_10 = arith.constant 0.000000e+00 : f32
      %18 = vector.broadcast %cst_10 : f32 to vector<64x256xf32>
      %19 = arith.maximumf %17, %18 : vector<64x256xf32>
      %20 = arith.truncf %19 : vector<64x256xf32> to vector<64x256xbf16>
      %c0_11 = arith.constant 0 : index
      %c0_12 = arith.constant 0 : index
      %c0_13 = arith.constant 0 : index
      %21 = vector.load %arg6[%c0_11, %c0_12, %c0_13] : memref<1x256x128xbf16, #tpu.memory_space<vmem>>, vector<1x256x128xbf16>
      %22 = vector.shape_cast %21 : vector<1x256x128xbf16> to vector<256x128xbf16>
      %cst_14 = arith.constant dense<0.000000e+00> : vector<64x128xf32>
      %23 = tpu.matmul %20, %22, %cst_14 {dimension_numbers = #tpu.dot_dimension_numbers<[1], [0], [0], [1], [0, 0, 1, 1], [], []>} : vector<64x256xbf16>, vector<256x128xbf16>, vector<64x128xf32> -> vector<64x128xf32>
      %c0_15 = arith.constant 0 : index
      %c0_16 = arith.constant 0 : index
      %c0_17 = arith.constant 0 : index
      %24 = vector.load %arg7[%c0_15, %c0_16, %c0_17] : memref<1x1x128xf32, #tpu.memory_space<vmem>>, vector<1x1x128xf32>
      %25 = vector.shape_cast %24 : vector<1x1x128xf32> to vector<1x128xf32>
      %26 = vector.broadcast %25 : vector<1x128xf32> to vector<64x128xf32>
      %27 = arith.addf %23, %26 : vector<64x128xf32>
      %c0_18 = arith.constant 0 : index
      %c0_19 = arith.constant 0 : index
      %28 = vector.load %arg8[%c0_18, %c0_19] : memref<64x1xf32, #tpu.memory_space<vmem>>, vector<64x1xf32>
      %29 = vector.broadcast %28 : vector<64x1xf32> to vector<64x128xf32>
      %30 = arith.mulf %29, %27 : vector<64x128xf32>
      %c0_20 = arith.constant 0 : index
      %c0_21 = arith.constant 0 : index
      %31 = vector.load %arg9[%c0_20, %c0_21] : memref<64x128xf32, #tpu.memory_space<vmem>>, vector<64x128xf32>
      tpu.vector_store %arg9[%c0_20, %c0_21], %30 {strides = array<i32>} : memref<64x128xf32, #tpu.memory_space<vmem>>, vector<64x128xf32>,
    } else {
    }
    %5 = arith.index_cast %arg0 : i32 to index
    %6 = memref.load %arg2[%5] : memref<16xi32, #tpu.memory_space<smem>>
    %c0_i32_1 = arith.constant 0 : i32
    %7 = arith.cmpi eq, %6, %c0_i32_1 : i32
    %8 = arith.extui %7 : i1 to i32
    %c0_i32_2 = arith.constant 0 : i32
    %9 = arith.cmpi ne, %8, %c0_i32_2 : i32
    scf.if %9 {
      %cst = arith.constant 0.000000e+00 : f32
      %10 = vector.broadcast %cst : f32 to vector<64x128xf32>
      %c0 = arith.constant 0 : index
      %c0_3 = arith.constant 0 : index
      %11 = vector.load %arg9[%c0, %c0_3] : memref<64x128xf32, #tpu.memory_space<vmem>>, vector<64x128xf32>
      tpu.vector_store %arg9[%c0, %c0_3], %10 {strides = array<i32>} : memref<64x128xf32, #tpu.memory_space<vmem>>, vector<64x128xf32>,
    } else {
    }
    return
  }
  func.func @transform_0(%arg0: i32, %arg1: memref<16xi32, #tpu.memory_space<smem>>, %arg2: memref<16xi32, #tpu.memory_space<smem>>) -> (i32, i32) {
    %c0_i32 = arith.constant 0 : i32
    %c0_i32_0 = arith.constant 0 : i32
    return %arg0, %c0_i32 : i32, i32
  }
  func.func @transform_1(%arg0: i32, %arg1: memref<16xi32, #tpu.memory_space<smem>>, %arg2: memref<16xi32, #tpu.memory_space<smem>>) -> (i32, i32, i32) {
    %0 = arith.index_cast %arg0 : i32 to index
    %1 = memref.load %arg1[%0] : memref<16xi32, #tpu.memory_space<smem>>
    %c0_i32 = arith.constant 0 : i32
    %c0_i32_0 = arith.constant 0 : i32
    %c0_i32_1 = arith.constant 0 : i32
    return %1, %c0_i32, %c0_i32_0 : i32, i32, i32
  }
  func.func @transform_2(%arg0: i32, %arg1: memref<16xi32, #tpu.memory_space<smem>>, %arg2: memref<16xi32, #tpu.memory_space<smem>>) -> (i32, i32, i32) {
    %0 = arith.index_cast %arg0 : i32 to index
    %1 = memref.load %arg1[%0] : memref<16xi32, #tpu.memory_space<smem>>
    %c0_i32 = arith.constant 0 : i32
    %c0_i32_0 = arith.constant 0 : i32
    %c0_i32_1 = arith.constant 0 : i32
    return %1, %c0_i32, %c0_i32_0 : i32, i32, i32
  }
  func.func @transform_3(%arg0: i32, %arg1: memref<16xi32, #tpu.memory_space<smem>>, %arg2: memref<16xi32, #tpu.memory_space<smem>>) -> (i32, i32, i32) {
    %0 = arith.index_cast %arg0 : i32 to index
    %1 = memref.load %arg1[%0] : memref<16xi32, #tpu.memory_space<smem>>
    %c0_i32 = arith.constant 0 : i32
    %c0_i32_0 = arith.constant 0 : i32
    %c0_i32_1 = arith.constant 0 : i32
    return %1, %c0_i32, %c0_i32_0 : i32, i32, i32
  }
  func.func @transform_4(%arg0: i32, %arg1: memref<16xi32, #tpu.memory_space<smem>>, %arg2: memref<16xi32, #tpu.memory_space<smem>>) -> (i32, i32, i32) {
    %0 = arith.index_cast %arg0 : i32 to index
    %1 = memref.load %arg1[%0] : memref<16xi32, #tpu.memory_space<smem>>
    %c0_i32 = arith.constant 0 : i32
    %c0_i32_0 = arith.constant 0 : i32
    %c0_i32_1 = arith.constant 0 : i32
    return %1, %c0_i32, %c0_i32_0 : i32, i32, i32
  }
  func.func @transform_5(%arg0: i32, %arg1: memref<16xi32, #tpu.memory_space<smem>>, %arg2: memref<16xi32, #tpu.memory_space<smem>>) -> (i32, i32) {
    %c0_i32 = arith.constant 0 : i32
    %c0_i32_0 = arith.constant 0 : i32
    return %arg0, %c0_i32 : i32, i32
  }
  func.func @transform_6(%arg0: i32, %arg1: memref<16xi32, #tpu.memory_space<smem>>, %arg2: memref<16xi32, #tpu.memory_space<smem>>) -> (i32, i32) {
    %c0_i32 = arith.constant 0 : i32
    %c0_i32_0 = arith.constant 0 : i32
    return %arg0, %c0_i32 : i32, i32
  }
}

</mosaic_0001>

<bundles_post_ra>
// kernel: tpu_custom_call.1
= control target key start
LH: loop header
LB: loop body
LE: loop exit
PB: predicated region body
PF: predicated region fallthrough
CT: control target
= control target key end

     0   :  { %s1673_s11 = smov [#allocation3]   ;;  %s1674_s12 = smov [#allocation4]   ;;  %s2183_s0 = inlined_call_operand.vmem [shape: s32[16], index: 0, kind: input, shape index: {}]   ;;  %s2184_s2 = inlined_call_operand.hbm [shape: bf16[1024,128], index: 2, kind: input, shape index: {}]   ;;  %s2185_s3 = inlined_call_operand.vmem [shape: bf16[8,128,256], index: 3, kind: input, shape index: {}]   ;;  %s2186_s4 = inlined_call_operand.hbm [shape: f32[8,1,256], index: 4, kind: input, shape index: {}]   ;;  %s2187_s5 = inlined_call_operand.hbm [shape: bf16[8,256,128], index: 5, kind: input, shape index: {}]   ;;  %s2188_s6 = inlined_call_operand.vmem [shape: f32[8,1,128], index: 6, kind: input, shape index: {}]   ;;  %s2189_s7 = inlined_call_operand.vmem [shape: f32[1024,1], index: 7, kind: input, shape index: {}]   ;;  %s2190_s8 = inlined_call_operand.hbm [shape: f32[1024,128], index: 8, kind: output, shape index: {}]   ;;  %s2191_s1 = inlined_call_operand.vmem [shape: s32[16], index: 1, kind: input, shape index: {}]  }
   0x1   :  { %2205 = sst [smem:[#allocation29_spill]] %s2184_s2  ;;  %s14_s29 = sshll.u32 %s2183_s0, 4  ;;  %s15_s29 = int_to_ptr.vmem [resolvable:$true] %s14_s29 }
   0x2   :  { %2206 = sst [smem:[#allocation30_spill]] %s2185_s3  ;;  %s19_s10 = sshll.u32 %s2191_s1, 4  ;;  %s20_s10 = int_to_ptr.vmem [resolvable:$true] %s19_s10 }
   0x3   :  { %2207 = sst [smem:[#allocation31_spill]] %s2186_s4 }
   0x4   :  { %2208 = sst [smem:[#allocation32_spill]] %s2187_s5 }
   0x5   :  { %2209 = sst [smem:[#allocation33_spill]] %s2188_s6 }
   0x6   :  { %2210 = sst [smem:[#allocation34_spill]] %s2189_s7 }
   0x7   :  { %2211 = sst [smem:[#allocation35_spill]] %s2190_s8 }
   0x8   :  { %17 = dma.vmem_to_smem %s15_s29, 16, %s1673_s11, [#allocation2] }
   0x9   :  { %22 = dma.vmem_to_smem %s20_s10, 16, %s1674_s12, [#allocation2] }
   0xa   :  { %1615 = dma.done.wait [#allocation2], 32 }
   0xb   :  { %1616 = vsyncadd [#allocation2], 4294967264 }
   0xc   :  { %25 = sfence }
   0xd   :  { %26 = vsyncpa [#allocation6], 0 }
   0xe   :  { %28 = vsyncpa [#allocation6 + $0x1], 0 }
   0xf   :  { %29 = vsyncpa [#allocation9], 0 }
  0x10   :  { %31 = vsyncpa [#allocation9 + $0x1], 0 }
  0x11   :  { %32 = vsyncpa [#allocation7], 0 }
  0x12   :  { %34 = vsyncpa [#allocation7 + $0x1], 0  ;;  %s1732_s0 = smov 0   ;;  %s1734_s13 = smov 0  }
  0x13   :  { %s1736_s1 = smov 0   ;;  %s1738_s14 = smov 0  }
  0x14   :  { %s1740_s15 = smov 0   ;;  %s1742_s16 = smov 0  }
  0x15   :  { %s1744_s17 = smov 0   ;;  %s1746_s18 = smov 0  }
  0x16   :  { %s1748_s19 = smov 0   ;;  %s1750_s20 = smov 0  }
  0x17 LB: > { %2212 = sst [smem:[#allocation21_spill]] %s1651_s15  ;;  %s1781_s21 = sadd.s32 4294967295, %s1671_s20   ;;  %s1671_s20 = sphi %s1750_s20, %s2253_s20   ;;  %s1667_s19 = sphi %s1748_s19, %s2259_s19   ;;  %s1663_s18 = sphi %s1746_s18, %s2258_s18   ;;  %s1659_s17 = sphi %s1744_s17, %s2257_s17   ;;  %s1655_s16 = sphi %s1742_s16, %s2256_s16   ;;  %s1651_s15 = sphi %s1740_s15, %s2255_s15   ;;  %s1647_s14 = sphi %s1738_s14, %s2254_s14   ;;  %s1643_s1 = sphi %s1736_s1, %s2262_s1   ;;  %s1639_s13 = sphi %s1734_s13, %s2261_s13   ;;  %s1635_s0 = sphi %s1732_s0, %s2260_s0  }
  0x18   : > { %2213 = sst [smem:[#allocation22_spill]] %s1655_s16  ;;  %s1784_s22 = sadd.s32 1, %s1671_s20  }
  0x19   : > { %2214 = sst [smem:[#allocation23_spill]] %s1663_s18  ;;  %p2200_p0 = scmp.eq.s32.totalorder %s1671_s20, 0 }
  0x1a   : > { %2215 = sst [smem:[#allocation24_spill]] %s1667_s19  ;;  %p2196_p1 = scmp.eq.s32.totalorder %s1781_s21, 0 }
  0x1b   : > { %2216 = sst [smem:[#allocation25_spill]] %s1784_s22  ;;  %s103_s24 = sadd.s32 1, %s1655_s16 }
  0x1c   : > { %s98_s23 = sld [smem:[#allocation3 + %s1671_s20]]  ;;  %p110_p2 = scmp.ne.s32.totalorder %s1655_s16, %s1651_s15 }
  0x1d   : > { %s99_s25 = sld [smem:[#allocation3 + %s1784_s22]]  ;;  %p116_p3 = scmp.ne.s32.totalorder %s1651_s15, %s1647_s14 }
  0x1e   : > { %s1795_s26 = sld [smem:[#allocation3 + %s1784_s22]]  ;;  %p1799_p4 = por %p110_p2, %p2200_p0 }
  0x1f   : > { %p1805_p5 = por %p116_p3, %p2196_p1  ;;  %p2195_p6 = scmp.lt.s32.totalorder %s1671_s20, 16 }
  0x20   : > { %s280_s29 = sand.u32 1, %s1671_s20   ;;  %s282_s30 = sand.u32 1, %s1655_s16  }
  0x21   : > { %s1104_s9 = sshll.u32 %s282_s30, 1  ;;  %p1831_p8 = pnand %p2195_p6, %p1799_p4 }
  0x22   : > { %s284_s11 = scalar_lea.vmem [#allocation8], %s1104_s9  ;;  %p1109_p9 = scmp.ge.s32.totalorder %s1671_s20, 1 }
  0x23   : > { %s100_s10 = ssub.s32 %s98_s23, %s99_s25  ;;  %s1812_s12 = sshll.u32 %s284_s11, 4 }
  0x24   : > { %p101_p7 = scmp.eq.s32.totalorder %s100_s10, 0  ;;  %2219 = sst [smem:[#allocation26_spill]] %s1812_s12 }
  0x25   : > { %s1310_s14 = scalar_select %p1799_p4, [#allocation3], [#allocation12] }
  0x26   : > { %s1817_s8 = scalar_select %p101_p7, %s1655_s16, %s103_s24  }
  0x27   : > { %s1311_s6 = scalar_select %p1799_p4, %s1671_s20, 0 }
  0x28   : > { %2220 = sst [smem:[#allocation27_spill]] %s1817_s8  ;;  %s2264_s14 = smov (!%p2195_p6, %s1310_s14), [#allocation14] }
  0x29   : > { %s2266_s6 = smov (!%p2195_p6, %s1311_s6), 0  ;;  %p338_p10 = scmp.lt.s32.totalorder %s1671_s20, 17 }
  0x2a   : > { %s285_s25 = sld [smem:[%s2264_s14 + %s2266_s6]]  ;;  %s1098_s30 = sadd.s32 4294967294, %s1671_s20  }
  0x2b   : > { %p1837_p11 = pnand %p1109_p9, %p338_p10  ;;  %s44_s10 = ssub.s32 %s1671_s20, %s1784_s22 }
  0x2c   : > { %s2223_s4 = sld [smem:[#allocation31_spill]]  ;;  %p1847_p12 = scmp.eq.s32.totalorder %s44_s10, 0 }
  0x2d   : > { %s47_s6 = sadd.s32 1, %s1667_s19  ;;  %p54_p13 = scmp.ne.s32.totalorder %s1667_s19, %s1663_s18 }
  0x2e   : > { %s1854_s14 = scalar_lea.sflag [#allocation9], %s280_s29  ;;  %p1461_p3 = pneg %p1831_p8 }
  0x30   : > { %s1105_s9 = sshll.u32 %s285_s25, 1 }
  0x32   : > { %s289_s27 = scalar_lea.hbm %s2223_s4, %s1105_s9  ;;  %s1464_s9 = scalar_lea.hbm %s2223_s4, 16 }
  0x33   : > { %s291_s16 = sshll.u32 %s289_s27, 4  ;;  %s292_s16 = int_to_ptr.hbm [resolvable:$true] %s291_s16 }
  0x34   : > { %s1457_s3 = sshra.s32 %s292_s16, 4  ;;  %s1458_s3 = int_to_ptr.hbm [resolvable:$true] %s1457_s3 }
  0x35   : > { %s1459_s7 = scalar_lea.hbm %s1458_s3, 2  ;;  %p1465_p9 = scmp.lt.s32.totalorder %s1458_s3, %s2223_s4 }
  0x36   : > { %p1460_p2 = scmp.ne.s32.totalorder %s1458_s3, %s1459_s7  ;;  %p1466_p10 = scmp.lt.s32.totalorder %s1464_s9, %s1459_s7 }
  0x38   : > { %p1462_p4 = pnand %p1461_p3, %p1460_p2  ;;  %p1467_p6 = por %p1466_p10, %p1465_p9 }
  0x3a   : > { %p1463_p7 = pneg %p1462_p4 }
  0x3c   : > { %p1468_p1 = pnand %p1467_p6, %p1463_p7 }
  0x3e   : > { %1471 = shalt.err (!%p1468_p1)
}
  0x3f   : > { %s2225_s29 = sld [smem:[#allocation26_spill]]  ;;  %p1879_p1 = por %p2200_p0, %p54_p13 }
  0x40   : > { %s1872_s3 = scalar_select %p1847_p12, %s1667_s19, %s47_s6  }
  0x41   : > { %p60_p6 = scmp.ne.s32.totalorder %s1663_s18, %s1659_s17  ;;  %p222_p2 = scmp.eq.s32.totalorder %s1781_s21, 15 }
  0x42   : > { %2227 = sst [smem:[#allocation28_spill]] %s1872_s3  ;;  %p228_p3 = scmp.eq.s32.totalorder %s1098_s30, 15 }
  0x43   : > { %p2229_p4 = scmp.eq.s32.totalorder %s1781_s21, 0  ;;  %s1269_s25 = sshll.u32 %s1671_s20, 5 }
  0x44   : > { %p1900_p12 = por %p228_p3, %p60_p6  ;;  %s2233_s2 = sld [smem:[#allocation29_spill]] }
  0x45   : > { %s2226_s27 = int_to_ptr.vmem [resolvable:$true] %s2225_s29  ;;  %p1888_p7 = por %p2229_p4, %p60_p6 }
  0x46   : > { %1329 = dma.hbm_to_vmem [thread:$0]  (!%p1831_p8), %s292_s16, 32, %s2226_s27, %s1854_s14  }
  0x47   : > { %s248_s16 = sand.u32 1, %s1667_s19   ;;  %p1896_p8 = por %p222_p2, %p54_p13 }
  0x48   : > { %s2232_s6 = scalar_select %p1900_p12, 1, 0 }
  0x49   : > { %s1101_s8 = sshll.u32 %s248_s16, 5  ;;  %p2234_p13 = scmp.lt.s32.totalorder %s1671_s20, 16 }
  0x4a   : > { %s257_s30 = scalar_lea.hbm %s2233_s2, %s1269_s25  ;;  %s252_s11 = scalar_lea.vmem [#allocation5], %s1101_s8 }
  0x4b   : > { %s260_s29 = sshll.u32 %s252_s11, 4  ;;  %s258_s27 = sshll.u32 %s257_s30, 4  ;;  %s261_s29 = int_to_ptr.vmem [resolvable:$true] %s260_s29  ;;  %s259_s27 = int_to_ptr.hbm [resolvable:$true] %s258_s27 }
  0x4c   : > { %p1912_p9 = pnand %p2234_p13, %p1879_p1  ;;  %s249_s3 = scalar_lea.sflag [#allocation6], %s248_s16 }
  0x4d   : > { %s1487_s19 = sshra.s32 %s259_s27, 4  ;;  %s1494_s9 = scalar_lea.hbm %s2233_s2, 512  ;;  %s1488_s19 = int_to_ptr.hbm [resolvable:$true] %s1487_s19 }
  0x4e   : > { %s1489_s22 = scalar_lea.hbm %s1488_s19, 32  ;;  %p1491_p6 = pneg %p1912_p9 }
  0x4f   : > { %p1490_p10 = scmp.ne.s32.totalorder %s1488_s19, %s1489_s22  ;;  %p1495_p1 = scmp.lt.s32.totalorder %s1488_s19, %s2233_s2 }
  0x50   : > { %p1496_p4 = scmp.lt.s32.totalorder %s1494_s9, %s1489_s22 }
  0x51   : > { %p1492_p2 = pnand %p1491_p6, %p1490_p10 }
  0x52   : > { %p1497_p13 = por %p1496_p4, %p1495_p1 }
  0x53   : > { %p1493_p3 = pneg %p1492_p2 }
  0x55   : > { %p1498_p0 = pnand %p1497_p13, %p1493_p3 }
  0x57   : > { %1501 = shalt.err (!%p1498_p0)
}
  0x58   : > { %s2201_s16 = smov 64   ;;  %s2202_s19 = smov 4  }
  0x59   : > { %1324 = dma.hbm_to_vmem [thread:$0]  (!%p1912_p9), %s259_s27, 512, %s261_s29, %s249_s3, %s2201_s16, %s2201_s16, %s2202_s19  }
  0x5a   : > { %s126_s22 = sld [smem:[#allocation3 + %s1671_s20]]  ;;  %p138_p0 = scmp.ne.s32.totalorder %s1643_s1, %s1639_s13 }
  0x5b   : > { %p144_p10 = scmp.ne.s32.totalorder %s1639_s13, %s1635_s0  ;;  %p2236_p6 = scmp.eq.s32.totalorder %s1671_s20, 0 }
  0x5c   : > { %p2237_p3 = scmp.eq.s32.totalorder %s1781_s21, 0  ;;  %s302_s11 = sand.u32 1, %s1643_s1  }
  0x5d   : > { %p140_p2 = por %p138_p0, %p2236_p6  ;;  %s131_s4 = sadd.s32 1, %s1643_s1 }
  0x5e   : > { %p1938_p1 = por %p144_p10, %p2237_p3  ;;  %s1106_s9 = sshll.u32 %s302_s11, 7 }
  0x5f   : > { %s1313_s8 = scalar_select %p140_p2, [#allocation3], [#allocation13] }
  0x60   : > { %s128_s25 = ssub.s32 %s126_s22, %s1795_s26  ;;  %p2239_p9 = scmp.lt.s32.totalorder %s1671_s20, 16 }
  0x61   : > { %p129_p4 = scmp.eq.s32.totalorder %s128_s25, 0  ;;  %s304_s29 = scalar_lea.vmem [#allocation10], %s1106_s9 }
  0x62   : > { %s1314_s7 = scalar_select %p140_p2, %s1671_s20, 0 }
  0x63   : > { %s1947_s10 = scalar_select %p129_p4, %s1643_s1, %s131_s4  }
  0x64   : > { %s2268_s8 = smov (!%p2239_p9, %s1313_s8), [#allocation15]  ;;  %p2240_p13 = pmov %p2239_p9 }
  0x65   : > { %p2241_p12 = pmov %p2239_p9  ;;  %s313_s27 = sshll.u32 %s304_s29, 4  ;;  %s314_s27 = int_to_ptr.vmem [resolvable:$true] %s313_s27 }
  0x66   : > { %s2270_s7 = smov (!%p2240_p13, %s1314_s7), 0  ;;  %s2243_s5 = sld [smem:[#allocation32_spill]] }
  0x67   : > { %p1955_p0 = pnand %p2241_p12, %p140_p2  ;;  %s305_s3 = sld [smem:[%s2268_s8 + %s2270_s7]] }
  0x69   : > { %p1521_p12 = pneg %p1955_p0 }
  0x6c   : > { %s1524_s9 = scalar_lea.hbm %s2243_s5, 1024 }
  0x6d   : > { %s1270_s26 = sshll.u32 %s305_s3, 7 }
  0x6e   : > { %s310_s11 = scalar_lea.hbm %s2243_s5, %s1270_s26 }
  0x6f   : > { %s311_s4 = sshll.u32 %s310_s11, 4  ;;  %s312_s4 = int_to_ptr.hbm [resolvable:$true] %s311_s4 }
  0x70   : > { %s1517_s16 = sshra.s32 %s312_s4, 4  ;;  %s1518_s16 = int_to_ptr.hbm [resolvable:$true] %s1517_s16 }
  0x71   : > { %s1519_s19 = scalar_lea.hbm %s1518_s16, 128  ;;  %p1525_p3 = scmp.lt.s32.totalorder %s1518_s16, %s2243_s5 }
  0x72   : > { %p1520_p10 = scmp.ne.s32.totalorder %s1518_s16, %s1519_s19  ;;  %p1526_p4 = scmp.lt.s32.totalorder %s1524_s9, %s1519_s19 }
  0x74   : > { %p1522_p6 = pnand %p1521_p12, %p1520_p10  ;;  %p1527_p9 = por %p1526_p4, %p1525_p3 }
  0x76   : > { %p1523_p2 = pneg %p1522_p6 }
  0x78   : > { %p1528_p13 = pnand %p1527_p9, %p1523_p2 }
  0x7a   : > { %1531 = shalt.err (!%p1528_p13)
}
  0x7b   : > { %s2244_s29 = smov 4   ;;  %s2245_s26 = smov 64  }
  0x7c   : > { %1334 = dma.hbm_to_vmem [thread:$0]  (!%p1955_p0), %s312_s4, 2048, %s314_s27, %s1854_s14, %s2245_s26, %s2245_s26, %s2244_s29  }
  0x7d   : > { %342 = sbr.rel (%p1837_p11) target bundleno = 566 (0x236), region = 44  ;;  %s1979_s2 = sand.u32 (!%p1837_p11), 1, %s1663_s18  }
  0x7e   : > { %s1110_s16 = sshll.u32 (!%p1837_p11), %s1979_s2, 5  ;;  %s345_s19 = scalar_lea.sflag (!%p1837_p11), [#allocation6], %s1979_s2 }
  0x7f   : > { %s1983_s22 = scalar_lea.vmem (!%p1837_p11), [#allocation5], %s1110_s16 }
  0x82   : > { %1618 = dma.done.wait (%p1888_p7), %s345_s19, 512  }
  0x83   : > { %1620 = vsyncadd (%p1888_p7), %s345_s19, 4294966784  ;;  %s354_s24 = sand.u32 1, %s1781_s21   ;;  %s356_s14 = sand.u32 1, %s1651_s15  }
  0x84   : > { %s1991_s0 = sshll.u32 %s356_s14, 1  ;;  %s355_s27 = scalar_lea.sflag [#allocation9], %s354_s24 }
  0x85   : > { %1622 = dma.done.wait (%p1805_p5), %s355_s27, 32  }
  0x86   : > { %1624 = vsyncadd (%p1805_p5), %s355_s27, 4294967264  ;;  %s366_s11 = sand.u32 1, %s1639_s13  }
  0x87   : > { %s1112_s23 = sshll.u32 %s366_s11, 7 }
  0x88   : > { %s1999_s4 = scalar_lea.vmem [#allocation10], %s1112_s23 }
  0x89   : > { %1626 = dma.done.wait (%p1938_p1), %s355_s27, 2048  }
  0x8a   : > { %1628 = vsyncadd (%p1938_p1), %s355_s27, 4294965248  ;;  %s1113_s8 = sshll.u32 %s1979_s2, 6  ;;  %s1116_s9 = sshll.u32 %s1781_s21, 3 }
  0x8b   : > { %s424_s28 = sld [smem:[#allocation3 + %s1781_s21]]  ;;  %p439_p5 = scmp.lt.s32.totalorder %s1116_s9, 127 }
  0x8c   : > { %s433_s7 = sld [smem:[#allocation3 + %s1781_s21]]  ;;  %s2026_s15 = scalar_lea.vmem [#allocation11], %s1113_s8 }
  0x8d   : > { %s445_s3 = sld [smem:[#allocation4 + %s1781_s21]]  ;;  %s2272_s9 = smov (!%p439_p5, %s1116_s9), 127 }
  0x8e   : > { %s1117_s29 = sshll.u32 %s2272_s9, 3  ;;  %s2246_s19 = sld [smem:[#allocation34_spill]] }
  0x8f   : > { %s2247_s11 = sld [smem:[#allocation30_spill]] }
  0x90   : > { %s2248_s9 = sld [smem:[#allocation33_spill]] }
  0x91   : > { %p425_p11 = scmp.lt.s32.totalorder %s424_s28, 7 }
  0x92   : > { %p434_p7 = scmp.lt.s32.totalorder %s433_s7, 7 }
  0x93   : > { %s2274_s28 = smov (!%p425_p11, %s424_s28), 7  ;;  %p1118_p1 = scmp.le.s32.totalorder %s445_s3, 0 }
  0x94   : > { %s2013_s24 = scalar_lea.vmem %s2246_s19, %s1117_s29  ;;  %s2276_s7 = smov (!%p434_p7, %s433_s7), 7 }
  0x95   : > { %s1271_s30 = sshll.u32 %s2274_s28, 7  ;;  %449 = sbr.rel (%p1118_p1) target bundleno = 523 (0x20b), region = 60 }
  0x96   : > { %s2020_s23 = scalar_lea.vmem %s2247_s11, %s1271_s30  ;;  %s436_s18 = scalar_lea.vmem %s2248_s9, %s2276_s7 }
  0x97   : > { %s2249_s5 = scalar_lea.vmem (!%p1118_p1), [#allocation8], %s1991_s0 }
  0x9a   : > { %v1193_v0 = vld [vmem:[%s2020_s23 + $0x70] sm:$0xf]  ;;  %v1291_v1 = vld [vmem:[%s2020_s23 + $0x74] sm:$0xf0]  ;;  %v1290_v2 = vld [vmem:[%s2020_s23 + $0x74] sm:$0xf] }
  0x9b   : > { %v1194_v3 = vor.u32 %v1291_v1, %v1193_v0  ;;  %v1195_v4 = vld [vmem:[%s2020_s23 + $0x78] sm:$0xf0]  ;;  %v1185_v5 = vld [vmem:[%s2020_s23 + $0x60] sm:$0xf]  ;;  %v1289_v6 = vld [vmem:[%s2020_s23 + $0x64] sm:$0xf0] }
  0x9c   : > { %v1198_v7 = vor.u32 %v1290_v2, %v1195_v4  ;;  %v1288_v8 = vld [vmem:[%s2020_s23 + $0x64] sm:$0xf]  ;;  %v1187_v9 = vld [vmem:[%s2020_s23 + $0x68] sm:$0xf0]  ;;  %v1186_v10 = vor.u32 %v1289_v6, %v1185_v5  ;;  %v1177_v12 = vld [vmem:[%s2020_s23 + $0x50] sm:$0xf] }
  0x9d   : > { %584 = vmatpush.bf16.msra.mxu0 %v1194_v3  ;;  %v1190_v11 = vor.u32 %v1288_v8, %v1187_v9  ;;  %v1287_v13 = vld [vmem:[%s2020_s23 + $0x54] sm:$0xf0]  ;;  %v1286_v14 = vld [vmem:[%s2020_s23 + $0x54] sm:$0xf]  ;;  %v1179_v15 = vld [vmem:[%s2020_s23 + $0x58] sm:$0xf0] }
  0x9e   : > { %613 = vmatpush.bf16.msra.mxu1 %v1198_v7  ;;  %v1178_v16 = vor.u32 %v1287_v13, %v1177_v12  ;;  %v1182_v17 = vor.u32 %v1286_v14, %v1179_v15  ;;  %v1169_v18 = vld [vmem:[%s2020_s23 + $0x40] sm:$0xf]  ;;  %v1285_v19 = vld [vmem:[%s2020_s23 + $0x44] sm:$0xf0]  ;;  %v1284_v20 = vld [vmem:[%s2020_s23 + $0x44] sm:$0xf] }
  0x9f   : > { %v1171_v21 = vld [vmem:[%s2020_s23 + $0x48] sm:$0xf0]  ;;  %v1170_v22 = vor.u32 %v1285_v19, %v1169_v18  ;;  %v1161_v24 = vld [vmem:[%s2020_s23 + $0x30] sm:$0xf]  ;;  %v1283_v25 = vld [vmem:[%s2020_s23 + $0x34] sm:$0xf0] }
  0xa0   : > { %v1174_v23 = vor.u32 %v1284_v20, %v1171_v21  ;;  %v1282_v26 = vld [vmem:[%s2020_s23 + $0x34] sm:$0xf]  ;;  %v1163_v27 = vld [vmem:[%s2020_s23 + $0x38] sm:$0xf0]  ;;  %v1162_v28 = vor.u32 %v1283_v25, %v1161_v24  ;;  %v1153_v30 = vld [vmem:[%s2020_s23 + $0x20] sm:$0xf] }
  0xa1   : > { %585 = vmatpush.bf16.msra.mxu0 %v1186_v10  ;;  %v1166_v29 = vor.u32 %v1282_v26, %v1163_v27  ;;  %v1281_v31 = vld [vmem:[%s2020_s23 + $0x24] sm:$0xf0]  ;;  %v1280_v32 = vld [vmem:[%s2020_s23 + $0x24] sm:$0xf]  ;;  %v1155_v33 = vld [vmem:[%s2020_s23 + $0x28] sm:$0xf0] }
  0xa2   : > { %614 = vmatpush.bf16.msra.mxu1 %v1190_v11  ;;  %v1154_v34 = vor.u32 %v1281_v31, %v1153_v30  ;;  %v1158_v35 = vor.u32 %v1280_v32, %v1155_v33  ;;  %v1145_v36 = vld [vmem:[%s2020_s23 + $0x10] sm:$0xf]  ;;  %v1279_v37 = vld [vmem:[%s2020_s23 + $0x14] sm:$0xf0]  ;;  %v1278_v38 = vld [vmem:[%s2020_s23 + $0x14] sm:$0xf] }
  0xa3   : > { %v1147_v39 = vld [vmem:[%s2020_s23 + $0x18] sm:$0xf0]  ;;  %v1146_v40 = vor.u32 %v1279_v37, %v1145_v36  ;;  %v1137_v42 = vld [vmem:[%s2020_s23] sm:$0xf]  ;;  %v1277_v43 = vld [vmem:[%s2020_s23 + $0x4] sm:$0xf0] }
  0xa4   : > { %v1150_v41 = vor.u32 %v1278_v38, %v1147_v39  ;;  %v1276_v44 = vld [vmem:[%s2020_s23 + $0x4] sm:$0xf]  ;;  %v1139_v45 = vld [vmem:[%s2020_s23 + $0x8] sm:$0xf0]  ;;  %v1138_v46 = vor.u32 %v1277_v43, %v1137_v42  ;;  %v1299_v50 = vld [vmem:[%s1999_s4 + $0x38] sm:$0xff]  ;;  %v1677_v9 = vmov 0  }
  0xa5   : > { %586 = vmatpush.bf16.msra.mxu0 %v1178_v16  ;;  %v1142_v47 = vor.u32 %v1276_v44, %v1139_v45  ;;  %v1272_v48 = vld [vmem:[%s1983_s22] sm:$0xff]  ;;  %v1273_v49 = vld [vmem:[%s1983_s22 + $0x8] sm:$0xff]  ;;  %798 = vmatpush.bf16.msra.mxu2 %v1299_v50  ;;  %v1298_v52 = vld [vmem:[%s1999_s4 + $0x30] sm:$0xff] }
  0xa6   : > { %615 = vmatpush.bf16.msra.mxu1 %v1182_v17  ;;  %v1307_v51 = vld [vmem:[%s1999_s4 + $0x78] sm:$0xff]  ;;  %v1306_v53 = vld [vmem:[%s1999_s4 + $0x70] sm:$0xff]  ;;  %v1297_v54 = vld [vmem:[%s1999_s4 + $0x28] sm:$0xff]  ;;  %1429 = vset.pattern.permute.xlu0 %v1677_v9 }
  0xa7   : > { %827 = vmatpush.bf16.msra.mxu3 %v1307_v51  ;;  %v1305_v55 = vld [vmem:[%s1999_s4 + $0x68] sm:$0xff]  ;;  %v1296_v56 = vld [vmem:[%s1999_s4 + $0x20] sm:$0xff]  ;;  %v1275_v59 = vld [vmem:[%s1983_s22 + $0x18] sm:$0xff]  ;;  %1430 = vset.pattern.permute.xlu1 %v1677_v9 }
  0xa8   : > { %v1304_v57 = vld [vmem:[%s1999_s4 + $0x60] sm:$0xff]  ;;  %v1274_v58 = vld [vmem:[%s1983_s22 + $0x10] sm:$0xff]  ;;  %v1295_v60 = vld [vmem:[%s1999_s4 + $0x18] sm:$0xff]  ;;  %1431 = vset.pattern.permute.xlu2 %v1677_v9 }
  0xa9   : > { %587 = vmatpush.bf16.msra.mxu0 %v1170_v22  ;;  %799 = vmatpush.bf16.msra.mxu2 %v1298_v52  ;;  %v1303_v61 = vld [vmem:[%s1999_s4 + $0x58] sm:$0xff]  ;;  %v1294_v62 = vld [vmem:[%s1999_s4 + $0x10] sm:$0xff]  ;;  %v1293_v0 = vld [vmem:[%s1999_s4 + $0x8] sm:$0xff] }
  0xaa   : > { %616 = vmatpush.bf16.msra.mxu1 %v1174_v23  ;;  %v1302_v63 = vld [vmem:[%s1999_s4 + $0x50] sm:$0xff]  ;;  %v1301_v1 = vld [vmem:[%s1999_s4 + $0x48] sm:$0xff]  ;;  %v1292_v2 = vld [vmem:[%s1999_s4] sm:$0xff] }
  0xab   : > { %828 = vmatpush.bf16.msra.mxu3 %v1306_v53  ;;  %v1300_v3 = vld [vmem:[%s1999_s4 + $0x40] sm:$0xff]  ;;  %v474_v4 = vld [vmem:[%s2249_s5] sm:$0x3]  ;;  %v858_v26 = vld [vmem:[%s2013_s24 + $0x10] sm:$0xff] }
  0xac   : > { %v2082_v7 = vperm.slane %v474_v4, 0  ;;  %v2084_v8 = vperm.slane %v474_v4, 1  ;;  %v856_v10 = vld [vmem:[%s2013_s24] sm:$0xff]  ;;  %v857_v21 = vld [vmem:[%s2013_s24 + $0x8] sm:$0xff]  ;;  %876 = vperm.xlu1 %1430, %v858_v26   ;;  %v859_v37 = vld [vmem:[%s2013_s24 + $0x18] sm:$0xff] }
  0xad   : > { %588 = vmatpush.bf16.msra.mxu0 %v1162_v28  ;;  %800 = vmatpush.bf16.msra.mxu2 %v1297_v54  ;;  %v860_v42 = vld [vmem:[%s2013_s24 + $0x20] sm:$0xff]  ;;  %v863_v44 = vld [vmem:[%s2013_s24 + $0x38] sm:$0xff]  ;;  %v861_v45 = vld [vmem:[%s2013_s24 + $0x28] sm:$0xff] }
  0xae   : > { %617 = vmatpush.bf16.msra.mxu1 %v1166_v29  ;;  %866 = vperm.xlu0 %1429, %v856_v10   ;;  %v1432_v10 = vld [vmem:[%s436_s18] ss:$0 sm:$0xff] }
  0xaf   : > { %829 = vmatpush.bf16.msra.mxu3 %v1305_v55  ;;  %886 = vperm.xlu2 %1431, %v860_v42  }
  0xb1   : > { %589 = vmatpush.bf16.msra.mxu0 %v1154_v34  ;;  %801 = vmatpush.bf16.msra.mxu2 %v1296_v56 }
  0xb2   : > { %618 = vmatpush.bf16.msra.mxu1 %v1158_v35 }
  0xb3   : > { %830 = vmatpush.bf16.msra.mxu3 %v1304_v57 }
  0xb4   : > { %881 = vperm.xlu1 %1430, %v859_v37  }
  0xb5   : > { %590 = vmatpush.bf16.msra.mxu0 %v1146_v40  ;;  %802 = vmatpush.bf16.msra.mxu2 %v1295_v60 }
  0xb6   : > { %619 = vmatpush.bf16.msra.mxu1 %v1150_v41  ;;  %871 = vperm.xlu0 %1429, %v857_v21   ;;  %v862_v41 = vld [vmem:[%s2013_s24 + $0x30] sm:$0xff] }
  0xb7   : > { %831 = vmatpush.bf16.msra.mxu3 %v1303_v61  ;;  %891 = vperm.xlu2 %1431, %v861_v45  }
  0xb9   : > { %591 = vmatpush.bf16.msra.mxu0 %v1138_v46  ;;  %803 = vmatpush.bf16.msra.mxu2 %v1294_v62 }
  0xba   : > { %620 = vmatpush.bf16.msra.mxu1 %v1142_v47 }
  0xbb   : > { %832 = vmatpush.bf16.msra.mxu3 %v1302_v63 }
  0xbc   : > { %592 = vmatmul.bf16.vlgmr.msra.gmra.mxu0 %v1272_v48  ;;  %901 = vperm.xlu1 %1430, %v863_v44  }
  0xbd   : > { %621 = vmatmul.bf16.vlgmr.msra.gmra.mxu1 %v1272_v48  ;;  %804 = vmatpush.bf16.msra.mxu2 %v1293_v0 }
  0xbe   : > { %896 = vperm.xlu0 %1429, %v862_v41  }
  0xbf   : > { %833 = vmatpush.bf16.msra.mxu3 %v1301_v1 }
  0xc1   : > { %805 = vmatpush.bf16.msra.mxu2 %v1292_v2 }
  0xc3   : > { %834 = vmatpush.bf16.msra.mxu3 %v1300_v3 }
  0xcc   : > { %597 = vmatmul.bf16.gmra.mxu0 %v1273_v49 }
  0xcd   : > { %626 = vmatmul.bf16.gmra.mxu1 %v1273_v49 }
  0xdc   : > { %602 = vmatmul.bf16.gmra.mxu0 %v1274_v58 }
  0xdd   : > { %631 = vmatmul.bf16.gmra.mxu1 %v1274_v58 }
  0xec   : > { %607 = vmatmul.bf16.gmra.mxu0 %v1275_v59 }
  0xed   : > { %636 = vmatmul.bf16.gmra.mxu1 %v1275_v59 }
 0x139   : > { %v593_v5 = vpop.f32.mrf.mxu0 }
 0x13a   : > { %v622_v6 = vpop.f32.mrf.mxu1  ;;  %v594_v11 = vadd.f32 %v593_v5, %v2082_v7 }
 0x13b   : > { %v623_v12 = vadd.f32 %v622_v6, %v2084_v8 }
 0x13c   : > { %v642_v17 = vmax.f32 %v594_v11, 0.0 }
 0x13d   : > { %v643_v19 = vmax.f32 %v623_v12, 0.0 }
 0x141   : > { %v595_v13 = vpop.f32.mrf.mxu0 }
 0x142   : > { %v596_v14 = vadd.f32 %v595_v13, %v2082_v7  ;;  %v624_v15 = vpop.f32.mrf.mxu1 }
 0x143   : > { %v625_v16 = vadd.f32 %v624_v15, %v2084_v8 }
 0x144   : > { %v644_v18 = vmax.f32 %v596_v14, 0.0 }
 0x145   : > { %v645_v20 = vmax.f32 %v625_v16, 0.0 }
 0x146   : > { %v658_v22 = vpack.c.bf16 %v644_v18, %v642_v17 }
 0x147   : > { %v659_v23 = vpack.c.bf16 %v645_v20, %v643_v19 }
 0x148   : > { %806 = vmatmul.bf16.vlgmr.msra.gmra.mxu2 %v658_v22  ;;  %v877_v22 = vpop.permute.xlu1 %876 }
 0x149   : > { %835 = vmatmul.bf16.vlgmr.msra.gmra.mxu3 %v659_v23  ;;  %v598_v24 = vpop.f32.mrf.mxu0 }
 0x14a   : > { %v627_v25 = vpop.f32.mrf.mxu1  ;;  %v599_v27 = vadd.f32 %v598_v24, %v2082_v7 }
 0x14b   : > { %v628_v28 = vadd.f32 %v627_v25, %v2084_v8 }
 0x14c   : > { %v646_v33 = vmax.f32 %v599_v27, 0.0 }
 0x14d   : > { %v647_v35 = vmax.f32 %v628_v28, 0.0 }
 0x151   : > { %v600_v29 = vpop.f32.mrf.mxu0 }
 0x152   : > { %v601_v30 = vadd.f32 %v600_v29, %v2082_v7  ;;  %v629_v31 = vpop.f32.mrf.mxu1 }
 0x153   : > { %v630_v32 = vadd.f32 %v629_v31, %v2084_v8 }
 0x154   : > { %v648_v34 = vmax.f32 %v601_v30, 0.0  ;;  %v882_v30 = vpop.permute.xlu1 %881 }
 0x155   : > { %v649_v36 = vmax.f32 %v630_v32, 0.0 }
 0x156   : > { %v660_v38 = vpack.c.bf16 %v648_v34, %v646_v33  ;;  %v887_v34 = vpop.permute.xlu2 %886 }
 0x157   : > { %v661_v39 = vpack.c.bf16 %v649_v36, %v647_v35 }
 0x158   : > { %811 = vmatmul.bf16.gmra.mxu2 %v660_v38 }
 0x159   : > { %840 = vmatmul.bf16.gmra.mxu3 %v661_v39  ;;  %v603_v40 = vpop.f32.mrf.mxu0 }
 0x15a   : > { %v632_v43 = vpop.f32.mrf.mxu1  ;;  %v604_v46 = vadd.f32 %v603_v40, %v2082_v7 }
 0x15b   : > { %v633_v47 = vadd.f32 %v632_v43, %v2084_v8 }
 0x15c   : > { %v650_v52 = vmax.f32 %v604_v46, 0.0 }
 0x15d   : > { %v651_v54 = vmax.f32 %v633_v47, 0.0 }
 0x15e   : > { %v892_v42 = vpop.permute.xlu2 %891 }
 0x161   : > { %v605_v48 = vpop.f32.mrf.mxu0 }
 0x162   : > { %v606_v49 = vadd.f32 %v605_v48, %v2082_v7  ;;  %v634_v50 = vpop.f32.mrf.mxu1 }
 0x163   : > { %v635_v51 = vadd.f32 %v634_v50, %v2084_v8 }
 0x164   : > { %v652_v53 = vmax.f32 %v606_v49, 0.0 }
 0x165   : > { %v653_v55 = vmax.f32 %v635_v51, 0.0 }
 0x166   : > { %v662_v56 = vpack.c.bf16 %v652_v53, %v650_v52 }
 0x167   : > { %v663_v57 = vpack.c.bf16 %v653_v55, %v651_v54  ;;  %v902_v55 = vpop.permute.xlu1 %901 }
 0x168   : > { %816 = vmatmul.bf16.gmra.mxu2 %v662_v56 }
 0x169   : > { %845 = vmatmul.bf16.gmra.mxu3 %v663_v57  ;;  %v608_v58 = vpop.f32.mrf.mxu0 }
 0x16a   : > { %v637_v59 = vpop.f32.mrf.mxu1  ;;  %v609_v60 = vadd.f32 %v608_v58, %v2082_v7 }
 0x16b   : > { %v638_v61 = vadd.f32 %v637_v59, %v2084_v8 }
 0x16c   : > { %v654_v2 = vmax.f32 %v609_v60, 0.0 }
 0x16d   : > { %v655_v4 = vmax.f32 %v638_v61, 0.0 }
 0x171   : > { %v610_v62 = vpop.f32.mrf.mxu0 }
 0x172   : > { %v611_v63 = vadd.f32 %v610_v62, %v2082_v7  ;;  %v639_v0 = vpop.f32.mrf.mxu1  ;;  %v867_v7 = vpop.permute.xlu0 %866 }
 0x173   : > { %v640_v1 = vadd.f32 %v639_v0, %v2084_v8 }
 0x174   : > { %v656_v3 = vmax.f32 %v611_v63, 0.0 }
 0x175   : > { %v657_v5 = vmax.f32 %v640_v1, 0.0 }
 0x176   : > { %v664_v6 = vpack.c.bf16 %v656_v3, %v654_v2 }
 0x177   : > { %v665_v9 = vpack.c.bf16 %v657_v5, %v655_v4 }
 0x178   : > { %821 = vmatmul.bf16.gmra.mxu2 %v664_v6 }
 0x179   : > { %850 = vmatmul.bf16.gmra.mxu3 %v665_v9 }
 0x17a   : > { %v872_v18 = vpop.permute.xlu0 %871 }
 0x182   : > { %v897_v49 = vpop.permute.xlu0 %896 }
 0x1cb   : > { %v807_v11 = vpop.f32.mrf.mxu2 }
 0x1cc   : > { %v808_v12 = vadd.f32 %v1432_v10, %v807_v11  ;;  %v836_v13 = vpop.f32.mrf.mxu3 }
 0x1ce   : > { %v837_v8 = vadd.f32 %v836_v13, %v808_v12 }
 0x1d0   : > { %v904_v14 = vmul.f32 %v867_v7, %v837_v8 }
 0x1d2   : > { %912 = vst [vmem:[%s2026_s15] sm:$0xff] %v904_v14 }
 0x1d3   : > { %v809_v15 = vpop.f32.mrf.mxu2 }
 0x1d4   : > { %v810_v16 = vadd.f32 %v1432_v10, %v809_v15  ;;  %v838_v17 = vpop.f32.mrf.mxu3 }
 0x1d6   : > { %v839_v19 = vadd.f32 %v838_v17, %v810_v16 }
 0x1d8   : > { %v905_v20 = vmul.f32 %v872_v18, %v839_v19 }
 0x1da   : > { %913 = vst [vmem:[%s2026_s15 + $0x8] sm:$0xff] %v905_v20 }
 0x1db   : > { %v812_v21 = vpop.f32.mrf.mxu2 }
 0x1dc   : > { %v813_v23 = vadd.f32 %v1432_v10, %v812_v21  ;;  %v841_v24 = vpop.f32.mrf.mxu3 }
 0x1de   : > { %v842_v25 = vadd.f32 %v841_v24, %v813_v23 }
 0x1e0   : > { %v906_v26 = vmul.f32 %v877_v22, %v842_v25 }
 0x1e2   : > { %914 = vst [vmem:[%s2026_s15 + $0x10] sm:$0xff] %v906_v26 }
 0x1e3   : > { %v814_v27 = vpop.f32.mrf.mxu2 }
 0x1e4   : > { %v815_v28 = vadd.f32 %v1432_v10, %v814_v27  ;;  %v843_v29 = vpop.f32.mrf.mxu3 }
 0x1e6   : > { %v844_v31 = vadd.f32 %v843_v29, %v815_v28 }
 0x1e8   : > { %v907_v32 = vmul.f32 %v882_v30, %v844_v31 }
 0x1ea   : > { %915 = vst [vmem:[%s2026_s15 + $0x18] sm:$0xff] %v907_v32 }
 0x1eb   : > { %v817_v33 = vpop.f32.mrf.mxu2 }
 0x1ec   : > { %v818_v35 = vadd.f32 %v1432_v10, %v817_v33  ;;  %v846_v36 = vpop.f32.mrf.mxu3 }
 0x1ee   : > { %v847_v37 = vadd.f32 %v846_v36, %v818_v35 }
 0x1f0   : > { %v908_v38 = vmul.f32 %v887_v34, %v847_v37 }
 0x1f2   : > { %916 = vst [vmem:[%s2026_s15 + $0x20] sm:$0xff] %v908_v38 }
 0x1f3   : > { %v819_v39 = vpop.f32.mrf.mxu2 }
 0x1f4   : > { %v820_v40 = vadd.f32 %v1432_v10, %v819_v39  ;;  %v848_v41 = vpop.f32.mrf.mxu3 }
 0x1f6   : > { %v849_v43 = vadd.f32 %v848_v41, %v820_v40 }
 0x1f8   : > { %v909_v44 = vmul.f32 %v892_v42, %v849_v43 }
 0x1fa   : > { %917 = vst [vmem:[%s2026_s15 + $0x28] sm:$0xff] %v909_v44 }
 0x1fb   : > { %v822_v45 = vpop.f32.mrf.mxu2 }
 0x1fc   : > { %v823_v46 = vadd.f32 %v1432_v10, %v822_v45  ;;  %v851_v47 = vpop.f32.mrf.mxu3 }
 0x1fe   : > { %v852_v48 = vadd.f32 %v851_v47, %v823_v46 }
 0x200   : > { %v910_v50 = vmul.f32 %v897_v49, %v852_v48 }
 0x202   : > { %918 = vst [vmem:[%s2026_s15 + $0x30] sm:$0xff] %v910_v50 }
 0x203   : > { %v824_v51 = vpop.f32.mrf.mxu2 }
 0x204   : > { %v825_v52 = vadd.f32 %v1432_v10, %v824_v51  ;;  %v853_v53 = vpop.f32.mrf.mxu3 }
 0x206   : > { %v854_v54 = vadd.f32 %v853_v53, %v825_v52 }
 0x208   : > { %v911_v56 = vmul.f32 %v902_v55, %v854_v54 }
 0x20a   : > { %919 = vst [vmem:[%s2026_s15 + $0x38] sm:$0xff] %v911_v56 }
 0x20b PF: > { %s920_s18 = sld [smem:[#allocation4 + %s1781_s21]] }
 0x211   : > { %p1263_p0 = scmp.ne.s32.totalorder %s920_s18, 0 }
 0x213   : > { %924 = sbr.rel (%p1263_p0) target bundleno = 545 (0x221), region = 64 }
 0x218   : > { %v1678_v57 = vmov 0.0  }
 0x219   : > { %925 = vst [vmem:[%s2026_s15] sm:$0xff] %v1678_v57 }
 0x21a   : > { %926 = vst [vmem:[%s2026_s15 + $0x8] sm:$0xff] %v1678_v57 }
 0x21b   : > { %927 = vst [vmem:[%s2026_s15 + $0x10] sm:$0xff] %v1678_v57 }
 0x21c   : > { %928 = vst [vmem:[%s2026_s15 + $0x18] sm:$0xff] %v1678_v57 }
 0x21d   : > { %929 = vst [vmem:[%s2026_s15 + $0x20] sm:$0xff] %v1678_v57 }
 0x21e   : > { %930 = vst [vmem:[%s2026_s15 + $0x28] sm:$0xff] %v1678_v57 }
 0x21f   : > { %931 = vst [vmem:[%s2026_s15 + $0x30] sm:$0xff] %v1678_v57 }
 0x220   : > { %932 = vst [vmem:[%s2026_s15 + $0x38] sm:$0xff] %v1678_v57 }
 0x221 PF: > { %s1308_s4 = sshll.u32 %s1781_s21, 6  ;;  %s2251_s7 = sld [smem:[#allocation35_spill]] }
 0x222   : > { %s946_s29 = sshll.u32 %s2026_s15, 4  ;;  %s934_s16 = scalar_lea.sflag [#allocation7], %s1979_s2  ;;  %s947_s29 = int_to_ptr.vmem [resolvable:$true] %s946_s29 }
 0x227   : > { %s945_s3 = scalar_lea.hbm %s2251_s7, %s1308_s4  ;;  %s1567_s21 = scalar_lea.hbm %s2251_s7, 1024 }
 0x228   : > { %s948_s26 = sshll.u32 %s945_s3, 4  ;;  %s949_s26 = int_to_ptr.hbm [resolvable:$true] %s948_s26 }
 0x229   : > { %s1561_s19 = sshra.s32 %s949_s26, 4  ;;  %s1562_s19 = int_to_ptr.hbm [resolvable:$true] %s1561_s19 }
 0x22a   : > { %s1563_s24 = scalar_lea.hbm %s1562_s19, 64  ;;  %p1568_p2 = scmp.lt.s32.totalorder %s1562_s19, %s2251_s7 }
 0x22b   : > { %p1564_p10 = scmp.ne.s32.totalorder %s1562_s19, %s1563_s24  ;;  %p1569_p3 = scmp.lt.s32.totalorder %s1567_s21, %s1563_s24 }
 0x22d   : > { %p1565_p12 = pnand %p1564_p10, %p1896_p8  ;;  %p1570_p4 = por %p1569_p3, %p1568_p2 }
 0x22f   : > { %p1566_p6 = pneg %p1565_p12 }
 0x231   : > { %p1571_p9 = pnand %p1570_p4, %p1566_p6 }
 0x233   : > { %1574 = shalt.err (!%p1571_p9)
}
 0x234   : > { %s1679_s15 = smov 128   ;;  %s1680_s2 = smov 8  }
 0x235   : > { %1319 = dma.vmem_to_hbm [thread:$0]  (%p1896_p8), %s947_s29, 1024, %s949_s26, %s934_s16, %s1679_s15, %s1679_s15, %s1680_s2  }
 0x236 PF: > { %p1340_p13 = scmp.ge.s32.totalorder %s1671_s20, 2  ;;  %s963_s23 = sand.u32 1, %s1659_s17  }
 0x237   : > { %p2252_p5 = scmp.ne.s32.totalorder %s2232_s6, 0  ;;  %s964_s9 = scalar_lea.sflag [#allocation7], %s963_s23 }
 0x239   : > { %p1336_p11 = pnand %p1340_p13, %p2252_p5 }
 0x23b   : > { %p1337_p7 = pneg %p1336_p11 }
 0x23d   : > { %1630 = dma.done.wait (%p1337_p7), %s964_s9, 1024  }
 0x23e   : > { %1632 = vsyncadd (%p1337_p7), %s964_s9, 4294966272  ;;  %s2253_s20 = sld [smem:[#allocation25_spill]]  ;;  %s2260_s0 = smov %s1639_s13 }
 0x23f   : > { %s2254_s14 = sld [smem:[#allocation21_spill]]  ;;  %s2261_s13 = smov %s1643_s1 }
 0x240   : > { %s2255_s15 = sld [smem:[#allocation22_spill]]  ;;  %s2262_s1 = smov %s1947_s10 }
 0x241   : > { %s2256_s16 = sld [smem:[#allocation27_spill]] }
 0x242   : > { %s2257_s17 = sld [smem:[#allocation23_spill]] }
 0x243   : > { %s2258_s18 = sld [smem:[#allocation24_spill]] }
 0x244   : > { %s2259_s19 = sld [smem:[#allocation28_spill]]  ;;  %p37_p8 = scmp.ge.s32.totalorder %s2253_s20, 18  }
 0x246   :  { %39 = sbr.rel (!%p37_p8) target bundleno = 23 (0x17), region = 130 }
 0x24b   :  { %970 = vsyncpa [#allocation6], 1 }
 0x24c   :  { %972 = vsyncpa [#allocation6 + $0x1], 1 }
 0x24d   :  { %973 = vsyncpa [#allocation9], 1 }
 0x24e   :  { %975 = vsyncpa [#allocation9 + $0x1], 1 }
 0x24f   :  { %976 = vsyncpa [#allocation7], 1 }
 0x250   :  { %978 = vsyncpa [#allocation7 + $0x1], 1 }

</bundles_post_ra>
